<compile_context>
chip_gen: v7x
topology: tpu7x:2x2x1
jax: 0.10.0
libtpu: 0.0.40
codegen_flags: <defaults>
</compile_context>

<pallas_src>
import functools

import jax
import jax.numpy as jnp
from jax.experimental import pallas as pl
from jax.experimental.pallas import tpu as pltpu

LANES = 128


def _mlp_kernel(params_ref, x_ref, o_ref, *, dims, chunk):
    """Batch-in-lanes VPU MLP, chunked so intermediates stay in vregs.

    params_ref: flat f32 SMEM vector, packed per layer as w(din,dout) row-major
                followed by bias(dout).
    x_ref/o_ref: (TM, 128) f32 slabs; every element is one batch sample.
    """
    n_layers = len(dims) - 1

    # Hoist all SMEM scalar reads (weights + biases) once per grid step so the
    # chunk loop below carries no sld/splat traffic.
    layer_params = []
    idx = 0
    for l in range(n_layers):
        din, dout = dims[l], dims[l + 1]
        w = [[params_ref[idx + i * dout + j] for j in range(dout)]
             for i in range(din)]
        b = [params_ref[idx + din * dout + j] for j in range(dout)]
        layer_params.append((w, b))
        idx += din * dout + dout

    tm = x_ref.shape[0]
    n_chunks = tm // chunk            # tm is a multiple of chunk by construction

    @pl.loop(0, n_chunks)
    def _(c):
        r = pl.multiple_of(c * chunk, chunk)
        h = [x_ref[pl.ds(r, chunk), :]]           # dims[0] == 1 input channel
        for l in range(n_layers):
            din, dout = dims[l], dims[l + 1]
            w, b = layer_params[l]
            new_h = []
            for j in range(dout):
                acc = h[0] * w[0][j]
                for i in range(1, din):
                    acc = acc + h[i] * w[i][j]
                acc = acc + b[j]
                if l < n_layers - 1:
                    acc = jnp.maximum(acc, 0.0)   # nn.ReLU
                new_h.append(acc)
            h = new_h
        o_ref[pl.ds(r, chunk), :] = h[0]          # dims[-1] == 1 output channel


def pack_params(weights, biases):
    """Pack (in,out)-layout weights + biases into one flat f32 vector (once,
    outside the per-call wrapper)."""
    parts = []
    for w, b in zip(weights, biases):
        parts.append(jnp.asarray(w, jnp.float32).reshape(-1))
        parts.append(jnp.asarray(b, jnp.float32).reshape(-1))
    return jnp.concatenate(parts)


@functools.partial(jax.jit, static_argnames=("dims", "tm_rows"))
def drnet_forward(x, params_flat, dims, *, tm_rows=2048):
    """x: (N, 1) f32.  params_flat: flat packed params.  dims: layer widths,
    e.g. (1, 2, 2, 2, 2, 2, 1)."""
    assert dims[0] == 1 and dims[-1] == 1, "kernel writes a single output channel"
    N = x.shape[0]
    rows = max(1, pl.cdiv(N, LANES))
    rows = ((rows + 7) // 8) * 8                  # sublane granule only (no tm padding)

    chunk = min(64, rows)                         # rows per in-kernel chunk (mult of 8)
    tm = min(tm_rows, rows)
    tm = max(chunk, (tm // chunk) * chunk)        # tm multiple of chunk
    if pl.cdiv(rows, tm) < 2 and rows >= 2 * chunk:
        # >=2 grid blocks so the "parallel" axis shards across both TensorCores
        # on dual-TC chips (v7x); no effect on single-TC chips.
        tm = max(chunk, ((rows // chunk + 1) // 2) * chunk)
    grid = pl.cdiv(rows, tm)                      # ragged last block is allowed

    xp = jnp.pad(x.reshape(-1).astype(jnp.float32),
                 (0, rows * LANES - N)).reshape(rows, LANES)

    flops_per_elem = 2 * sum(dims[l] * dims[l + 1] for l in range(len(dims) - 1))
    cost = pl.CostEstimate(
        flops=flops_per_elem * rows * LANES,
        transcendentals=0,
        bytes_accessed=2 * rows * LANES * 4 + int(params_flat.size) * 4,
    )

    out = pl.pallas_call(
        functools.partial(_mlp_kernel, dims=tuple(dims), chunk=chunk),
        out_shape=jax.ShapeDtypeStruct((rows, LANES), jnp.float32),
        grid=(grid,),
        in_specs=[
            pl.BlockSpec(memory_space=pltpu.MemorySpace.SMEM),  # params, whole
            pl.BlockSpec((tm, LANES), lambda i: (i, 0)),        # x tile
        ],
        out_specs=pl.BlockSpec((tm, LANES), lambda i: (i, 0)),  # lane-dense out
        compiler_params=pltpu.CompilerParams(
            dimension_semantics=("parallel",),
            vmem_limit_bytes=32 * 1024 * 1024,
        ),
        cost_estimate=cost,
    )(params_flat, xp)
    return out.reshape(-1)[:N].reshape(N, 1)


def init_drnet_params(key, width=2, n_layers=6):
    """kaiming_normal_(fan_in, relu) weights, zero biases (ReLULayers.init_weights).
    Weights are stored transposed vs torch: (in, out)."""
    dims = [1] + [width] * (n_layers - 1) + [1]      # n_layers Linear layers
    weights, biases = [], []
    for l in range(n_layers):
        din, dout = dims[l], dims[l + 1]
        key, sub = jax.random.split(key)
        std = (2.0 / din) ** 0.5                     # kaiming normal, fan_in, relu
        weights.append(std * jax.random.normal(sub, (din, dout), dtype=jnp.float32))
        biases.append(jnp.zeros((dout,), jnp.float32))
    return weights, biases, dims


def drnet_reference(x, weights, biases):
    h = x.astype(jnp.float32)
    n_layers = len(weights)
    for l, (w, b) in enumerate(zip(weights, biases)):
        h = jnp.dot(h, w, precision=jax.lax.Precision.HIGHEST) + b
        if l < n_layers - 1:
            h = jnp.maximum(h, 0.0)
    return h


# TODO(synk): AD_ReLU1/AD_ReLU2 activations and transform() are training-time
# plumbing not defined in the spec; forward with type='ReLU' never uses them.

if __name__ == "__main__":
    key = jax.random.PRNGKey(0)
    pkey, xkey = jax.random.split(key)

    width, n_layers = 2, 6
    weights, biases, dims = init_drnet_params(pkey, width=width, n_layers=n_layers)
    params = pack_params(weights, biases)            # packed once, reused per call
    dims = tuple(dims)

    # Small demo matching the module's (N, 1) regression input.
    N = 8
    x = jax.random.normal(xkey, (N, 1), dtype=jnp.float32)
    epoch, loss = 0, 0.0   # forward() ignores these; kept for signature parity

    y = jax.block_until_ready(drnet_forward(x, params, dims))
    y_ref = drnet_reference(x, weights, biases)
    assert y.shape == (N, 1)
    assert jnp.allclose(y, y_ref, atol=1e-5, rtol=1e-5)

    # Larger check: multi-block grid, in-kernel chunk loop, ragged last block.
    N2 = 20000
    x2 = jax.random.normal(jax.random.PRNGKey(1), (N2, 1), dtype=jnp.float32)
    y2 = jax.block_until_ready(drnet_forward(x2, params, dims))
    y2_ref = drnet_reference(x2, weights, biases)
    assert y2.shape == (N2, 1)
    assert jnp.allclose(y2, y2_ref, atol=1e-5, rtol=1e-5)

    print("KERNEL_OK")
</pallas_src>

<mosaic_0001>
module attributes {stable_mosaic.version = 11 : i64} {
  func.func @_mlp_kernel(%arg0: i32, %arg1: memref<31xf32, #tpu.memory_space<smem>>, %arg2: memref<8x128xf32, #tpu.memory_space<vmem>>, %arg3: memref<8x128xf32, #tpu.memory_space<vmem>>) attributes {dimension_semantics = [#tpu.dimension_semantics<parallel>], iteration_bounds = array<i64: 1>, scalar_prefetch = 0 : i64, scratch_operands = 0 : i64, tpu.core_type = #tpu.core_type<tc>, window_params = [{transform_indices = @transform_0, window_bounds = array<i64: 31>}, {transform_indices = @transform_1, window_bounds = array<i64: 8, 128>}, {transform_indices = @transform_2, window_bounds = array<i64: 8, 128>}]} {
    %c0 = arith.constant 0 : index
    %0 = memref.load %arg1[%c0] : memref<31xf32, #tpu.memory_space<smem>>
    %c1 = arith.constant 1 : index
    %1 = memref.load %arg1[%c1] : memref<31xf32, #tpu.memory_space<smem>>
    %c2 = arith.constant 2 : index
    %2 = memref.load %arg1[%c2] : memref<31xf32, #tpu.memory_space<smem>>
    %c3 = arith.constant 3 : index
    %3 = memref.load %arg1[%c3] : memref<31xf32, #tpu.memory_space<smem>>
    %c4 = arith.constant 4 : index
    %4 = memref.load %arg1[%c4] : memref<31xf32, #tpu.memory_space<smem>>
    %c5 = arith.constant 5 : index
    %5 = memref.load %arg1[%c5] : memref<31xf32, #tpu.memory_space<smem>>
    %c6 = arith.constant 6 : index
    %6 = memref.load %arg1[%c6] : memref<31xf32, #tpu.memory_space<smem>>
    %c7 = arith.constant 7 : index
    %7 = memref.load %arg1[%c7] : memref<31xf32, #tpu.memory_space<smem>>
    %c8 = arith.constant 8 : index
    %8 = memref.load %arg1[%c8] : memref<31xf32, #tpu.memory_space<smem>>
    %c9 = arith.constant 9 : index
    %9 = memref.load %arg1[%c9] : memref<31xf32, #tpu.memory_space<smem>>
    %c10 = arith.constant 10 : index
    %10 = memref.load %arg1[%c10] : memref<31xf32, #tpu.memory_space<smem>>
    %c11 = arith.constant 11 : index
    %11 = memref.load %arg1[%c11] : memref<31xf32, #tpu.memory_space<smem>>
    %c12 = arith.constant 12 : index
    %12 = memref.load %arg1[%c12] : memref<31xf32, #tpu.memory_space<smem>>
    %c13 = arith.constant 13 : index
    %13 = memref.load %arg1[%c13] : memref<31xf32, #tpu.memory_space<smem>>
    %c14 = arith.constant 14 : index
    %14 = memref.load %arg1[%c14] : memref<31xf32, #tpu.memory_space<smem>>
    %c15 = arith.constant 15 : index
    %15 = memref.load %arg1[%c15] : memref<31xf32, #tpu.memory_space<smem>>
    %c16 = arith.constant 16 : index
    %16 = memref.load %arg1[%c16] : memref<31xf32, #tpu.memory_space<smem>>
    %c17 = arith.constant 17 : index
    %17 = memref.load %arg1[%c17] : memref<31xf32, #tpu.memory_space<smem>>
    %c18 = arith.constant 18 : index
    %18 = memref.load %arg1[%c18] : memref<31xf32, #tpu.memory_space<smem>>
    %c19 = arith.constant 19 : index
    %19 = memref.load %arg1[%c19] : memref<31xf32, #tpu.memory_space<smem>>
    %c20 = arith.constant 20 : index
    %20 = memref.load %arg1[%c20] : memref<31xf32, #tpu.memory_space<smem>>
    %c21 = arith.constant 21 : index
    %21 = memref.load %arg1[%c21] : memref<31xf32, #tpu.memory_space<smem>>
    %c22 = arith.constant 22 : index
    %22 = memref.load %arg1[%c22] : memref<31xf32, #tpu.memory_space<smem>>
    %c23 = arith.constant 23 : index
    %23 = memref.load %arg1[%c23] : memref<31xf32, #tpu.memory_space<smem>>
    %c24 = arith.constant 24 : index
    %24 = memref.load %arg1[%c24] : memref<31xf32, #tpu.memory_space<smem>>
    %c25 = arith.constant 25 : index
    %25 = memref.load %arg1[%c25] : memref<31xf32, #tpu.memory_space<smem>>
    %c26 = arith.constant 26 : index
    %26 = memref.load %arg1[%c26] : memref<31xf32, #tpu.memory_space<smem>>
    %c27 = arith.constant 27 : index
    %27 = memref.load %arg1[%c27] : memref<31xf32, #tpu.memory_space<smem>>
    %c28 = arith.constant 28 : index
    %28 = memref.load %arg1[%c28] : memref<31xf32, #tpu.memory_space<smem>>
    %c29 = arith.constant 29 : index
    %29 = memref.load %arg1[%c29] : memref<31xf32, #tpu.memory_space<smem>>
    %c30 = arith.constant 30 : index
    %30 = memref.load %arg1[%c30] : memref<31xf32, #tpu.memory_space<smem>>
    %c0_i32 = arith.constant 0 : i32
    %c1_i32 = arith.constant 1 : i32
    %31 = arith.muli %c0_i32, %c1_i32 : i32
    %c0_i32_0 = arith.constant 0 : i32
    %32 = arith.addi %c0_i32_0, %31 : i32
    %c8_i32 = arith.constant 8 : i32
    %33 = arith.muli %32, %c8_i32 : i32
    %34 = tpu.assume_multiple %33, 8 : i32
    %35 = arith.index_cast %34 : i32 to index
    %c0_1 = arith.constant 0 : index
    %36 = vector.load %arg2[%35, %c0_1] : memref<8x128xf32, #tpu.memory_space<vmem>>, vector<8x128xf32>
    %37 = vector.broadcast %0 : f32 to vector<8x128xf32>
    %38 = arith.mulf %36, %37 : vector<8x128xf32>
    %39 = vector.broadcast %2 : f32 to vector<8x128xf32>
    %40 = arith.addf %38, %39 : vector<8x128xf32>
    %cst = arith.constant 0.000000e+00 : f32
    %41 = vector.broadcast %cst : f32 to vector<8x128xf32>
    %42 = arith.maximumf %40, %41 : vector<8x128xf32>
    %43 = vector.broadcast %1 : f32 to vector<8x128xf32>
    %44 = arith.mulf %36, %43 : vector<8x128xf32>
    %45 = vector.broadcast %3 : f32 to vector<8x128xf32>
    %46 = arith.addf %44, %45 : vector<8x128xf32>
    %cst_2 = arith.constant 0.000000e+00 : f32
    %47 = vector.broadcast %cst_2 : f32 to vector<8x128xf32>
    %48 = arith.maximumf %46, %47 : vector<8x128xf32>
    %49 = vector.broadcast %4 : f32 to vector<8x128xf32>
    %50 = arith.mulf %42, %49 : vector<8x128xf32>
    %51 = vector.broadcast %6 : f32 to vector<8x128xf32>
    %52 = arith.mulf %48, %51 : vector<8x128xf32>
    %53 = arith.addf %50, %52 : vector<8x128xf32>
    %54 = vector.broadcast %8 : f32 to vector<8x128xf32>
    %55 = arith.addf %53, %54 : vector<8x128xf32>
    %cst_3 = arith.constant 0.000000e+00 : f32
    %56 = vector.broadcast %cst_3 : f32 to vector<8x128xf32>
    %57 = arith.maximumf %55, %56 : vector<8x128xf32>
    %58 = vector.broadcast %5 : f32 to vector<8x128xf32>
    %59 = arith.mulf %42, %58 : vector<8x128xf32>
    %60 = vector.broadcast %7 : f32 to vector<8x128xf32>
    %61 = arith.mulf %48, %60 : vector<8x128xf32>
    %62 = arith.addf %59, %61 : vector<8x128xf32>
    %63 = vector.broadcast %9 : f32 to vector<8x128xf32>
    %64 = arith.addf %62, %63 : vector<8x128xf32>
    %cst_4 = arith.constant 0.000000e+00 : f32
    %65 = vector.broadcast %cst_4 : f32 to vector<8x128xf32>
    %66 = arith.maximumf %64, %65 : vector<8x128xf32>
    %67 = vector.broadcast %10 : f32 to vector<8x128xf32>
    %68 = arith.mulf %57, %67 : vector<8x128xf32>
    %69 = vector.broadcast %12 : f32 to vector<8x128xf32>
    %70 = arith.mulf %66, %69 : vector<8x128xf32>
    %71 = arith.addf %68, %70 : vector<8x128xf32>
    %72 = vector.broadcast %14 : f32 to vector<8x128xf32>
    %73 = arith.addf %71, %72 : vector<8x128xf32>
    %cst_5 = arith.constant 0.000000e+00 : f32
    %74 = vector.broadcast %cst_5 : f32 to vector<8x128xf32>
    %75 = arith.maximumf %73, %74 : vector<8x128xf32>
    %76 = vector.broadcast %11 : f32 to vector<8x128xf32>
    %77 = arith.mulf %57, %76 : vector<8x128xf32>
    %78 = vector.broadcast %13 : f32 to vector<8x128xf32>
    %79 = arith.mulf %66, %78 : vector<8x128xf32>
    %80 = arith.addf %77, %79 : vector<8x128xf32>
    %81 = vector.broadcast %15 : f32 to vector<8x128xf32>
    %82 = arith.addf %80, %81 : vector<8x128xf32>
    %cst_6 = arith.constant 0.000000e+00 : f32
    %83 = vector.broadcast %cst_6 : f32 to vector<8x128xf32>
    %84 = arith.maximumf %82, %83 : vector<8x128xf32>
    %85 = vector.broadcast %16 : f32 to vector<8x128xf32>
    %86 = arith.mulf %75, %85 : vector<8x128xf32>
    %87 = vector.broadcast %18 : f32 to vector<8x128xf32>
    %88 = arith.mulf %84, %87 : vector<8x128xf32>
    %89 = arith.addf %86, %88 : vector<8x128xf32>
    %90 = vector.broadcast %20 : f32 to vector<8x128xf32>
    %91 = arith.addf %89, %90 : vector<8x128xf32>
    %cst_7 = arith.constant 0.000000e+00 : f32
    %92 = vector.broadcast %cst_7 : f32 to vector<8x128xf32>
    %93 = arith.maximumf %91, %92 : vector<8x128xf32>
    %94 = vector.broadcast %17 : f32 to vector<8x128xf32>
    %95 = arith.mulf %75, %94 : vector<8x128xf32>
    %96 = vector.broadcast %19 : f32 to vector<8x128xf32>
    %97 = arith.mulf %84, %96 : vector<8x128xf32>
    %98 = arith.addf %95, %97 : vector<8x128xf32>
    %99 = vector.broadcast %21 : f32 to vector<8x128xf32>
    %100 = arith.addf %98, %99 : vector<8x128xf32>
    %cst_8 = arith.constant 0.000000e+00 : f32
    %101 = vector.broadcast %cst_8 : f32 to vector<8x128xf32>
    %102 = arith.maximumf %100, %101 : vector<8x128xf32>
    %103 = vector.broadcast %22 : f32 to vector<8x128xf32>
    %104 = arith.mulf %93, %103 : vector<8x128xf32>
    %105 = vector.broadcast %24 : f32 to vector<8x128xf32>
    %106 = arith.mulf %102, %105 : vector<8x128xf32>
    %107 = arith.addf %104, %106 : vector<8x128xf32>
    %108 = vector.broadcast %26 : f32 to vector<8x128xf32>
    %109 = arith.addf %107, %108 : vector<8x128xf32>
    %cst_9 = arith.constant 0.000000e+00 : f32
    %110 = vector.broadcast %cst_9 : f32 to vector<8x128xf32>
    %111 = arith.maximumf %109, %110 : vector<8x128xf32>
    %112 = vector.broadcast %23 : f32 to vector<8x128xf32>
    %113 = arith.mulf %93, %112 : vector<8x128xf32>
    %114 = vector.broadcast %25 : f32 to vector<8x128xf32>
    %115 = arith.mulf %102, %114 : vector<8x128xf32>
    %116 = arith.addf %113, %115 : vector<8x128xf32>
    %117 = vector.broadcast %27 : f32 to vector<8x128xf32>
    %118 = arith.addf %116, %117 : vector<8x128xf32>
    %cst_10 = arith.constant 0.000000e+00 : f32
    %119 = vector.broadcast %cst_10 : f32 to vector<8x128xf32>
    %120 = arith.maximumf %118, %119 : vector<8x128xf32>
    %121 = vector.broadcast %28 : f32 to vector<8x128xf32>
    %122 = arith.mulf %111, %121 : vector<8x128xf32>
    %123 = vector.broadcast %29 : f32 to vector<8x128xf32>
    %124 = arith.mulf %120, %123 : vector<8x128xf32>
    %125 = arith.addf %122, %124 : vector<8x128xf32>
    %126 = vector.broadcast %30 : f32 to vector<8x128xf32>
    %127 = arith.addf %125, %126 : vector<8x128xf32>
    %128 = arith.index_cast %34 : i32 to index
    %c0_11 = arith.constant 0 : index
    %129 = vector.load %arg3[%128, %c0_11] : memref<8x128xf32, #tpu.memory_space<vmem>>, vector<8x128xf32>
    tpu.vector_store %arg3[%128, %c0_11], %127 {strides = array<i32>} : memref<8x128xf32, #tpu.memory_space<vmem>>, vector<8x128xf32>,
    %c1_i32_12 = arith.constant 1 : i32
    return
  }
  func.func @transform_0(%arg0: i32) -> i32 {
    %c0_i32 = arith.constant 0 : i32
    %c0_i32_0 = arith.constant 0 : i32
    return %c0_i32 : i32
  }
  func.func @transform_1(%arg0: i32) -> (i32, i32) {
    %c0_i32 = arith.constant 0 : i32
    %c0_i32_0 = arith.constant 0 : i32
    return %arg0, %c0_i32 : i32, i32
  }
  func.func @transform_2(%arg0: i32) -> (i32, i32) {
    %c0_i32 = arith.constant 0 : i32
    %c0_i32_0 = arith.constant 0 : i32
    return %arg0, %c0_i32 : i32, i32
  }
}

</mosaic_0001>

<bundles_post_ra>
// kernel: drnet_forward.1
= control target key start
LH: loop header
LB: loop body
LE: loop exit
PB: predicated region body
PF: predicated region fallthrough
CT: control target
= control target key end

     0   :  { %7 = vsyncpa [#allocation3], 0  ;;  %s249_s0 = inlined_call_operand.vmem [shape: f32[31], index: 0, kind: input, shape index: {}]   ;;  %s250_s1 = inlined_call_operand.vmem [shape: f32[8,128], index: 1, kind: input, shape index: {}]   ;;  %s251_s2 = inlined_call_operand.vmem [shape: f32[8,128], index: 2, kind: output, shape index: {}]  }
   0x1   :  { %s14_s11 = sshll.u32 %s249_s0, 4  ;;  %s15_s11 = int_to_ptr.vmem [resolvable:$true] %s14_s11 }
   0x2   :  { %s174_s12 = scalar_lea.vmem %s15_s11, 16  ;;  %p179_p1 = scmp.lt.s32.totalorder %s15_s11, %s15_s11 }
   0x3   :  { %p175_p0 = scmp.ne.s32.totalorder %s15_s11, %s174_s12  ;;  %p180_p2 = scmp.lt.s32.totalorder %s174_s12, %s174_s12 }
   0x5   :  { %p181_p3 = por %p180_p2, %p179_p1 }
   0x7   :  { %p182_p4 = pnand %p181_p3, %p175_p0 }
   0x9   :  { %185 = shalt.err (!%p182_p4)
}
   0xa   :  { %s188_s13 = smov [#allocation2]  }
   0xb   :  { %17 = dma.vmem_to_smem %s15_s11, 16, %s188_s13, [#allocation3]  }
   0xc   :  { %186 = dma.done.wait [#allocation3], 16  }
   0xd   :  { %187 = vsyncadd [#allocation3], 4294967280 }
   0xe   :  { %23 = sfence }
   0xf   :  { %s24_s14 = sld [smem:[#allocation2]]  ;;  %s143_s15 = sld [smem:[#allocation2 + $0x1]]  ;;  %v55_v0 = vld [vmem:[%s250_s1] sm:$0xff] }
  0x10   :  { %s144_s16 = sld [smem:[#allocation2 + $0x2]]  ;;  %s145_s17 = sld [smem:[#allocation2 + $0x3]] }
  0x11   :  { %s146_s18 = sld [smem:[#allocation2 + $0x4]]  ;;  %s147_s19 = sld [smem:[#allocation2 + $0x5]] }
  0x12   :  { %s148_s0 = sld [smem:[#allocation2 + $0x6]]  ;;  %s149_s20 = sld [smem:[#allocation2 + $0x7]] }
  0x13   :  { %s210_s23 = sld [smem:[#allocation2 + $0x8]]  ;;  %s212_s24 = sld [smem:[#allocation2 + $0x9]] }
  0x14   :  { %s214_s25 = sld [smem:[#allocation2 + $0xa]]  ;;  %s216_s26 = sld [smem:[#allocation2 + $0xb]] }
  0x15   :  { %v56_v1 = vstv %s24_s14  ;;  %v61_v2 = vstv %s143_s15  ;;  %s218_s27 = sld [smem:[#allocation2 + $0xc]]  ;;  %s220_s1 = sld [smem:[#allocation2 + $0xd]] }
  0x16   :  { %v57_v3 = vmul.f32 %v56_v1, %v55_v0  ;;  %v58_v4 = vstv %s144_s16  ;;  %v62_v5 = vmul.f32 %v61_v2, %v55_v0  ;;  %v63_v6 = vstv %s145_s17  ;;  %s156_s28 = sld [smem:[#allocation2 + $0xe]]  ;;  %s157_s29 = sld [smem:[#allocation2 + $0xf]] }
  0x17   :  { %v66_v9 = vstv %s146_s18  ;;  %v74_v11 = vstv %s147_s19  ;;  %s224_s30 = sld [smem:[#allocation2 + $0x10]]  ;;  %s226_s3 = sld [smem:[#allocation2 + $0x11]] }
  0x18   :  { %v59_v7 = vadd.f32 %v58_v4, %v57_v3  ;;  %v64_v8 = vadd.f32 %v63_v6, %v62_v5  ;;  %v68_v10 = vstv %s148_s0  ;;  %v76_v12 = vstv %s149_s20  ;;  %s228_s4 = sld [smem:[#allocation2 + $0x12]]  ;;  %s230_s5 = sld [smem:[#allocation2 + $0x13]] }
  0x19   :  { %v71_v19 = vstv %s210_s23  ;;  %v79_v20 = vstv %s212_s24  ;;  %s162_s6 = sld [smem:[#allocation2 + $0x14]]  ;;  %s163_s7 = sld [smem:[#allocation2 + $0x15]] }
  0x1a   :  { %v60_v13 = vmax.f32 %v59_v7, 0.0  ;;  %v65_v14 = vmax.f32 %v64_v8, 0.0  ;;  %v82_v25 = vstv %s214_s25  ;;  %v90_v27 = vstv %s216_s26  ;;  %s236_s8 = sld [smem:[#allocation2 + $0x16]]  ;;  %s238_s9 = sld [smem:[#allocation2 + $0x17]] }
  0x1b   :  { %v84_v26 = vstv %s218_s27  ;;  %v92_v28 = vstv %s220_s1  ;;  %s166_s10 = sld [smem:[#allocation2 + $0x18]]  ;;  %s167_s11 = sld [smem:[#allocation2 + $0x19]] }
  0x1c   :  { %v67_v15 = vmul.f32 %v66_v9, %v60_v13  ;;  %v69_v16 = vmul.f32 %v68_v10, %v65_v14  ;;  %v75_v17 = vmul.f32 %v74_v11, %v60_v13  ;;  %v77_v18 = vmul.f32 %v76_v12, %v65_v14  ;;  %s168_s12 = sld [smem:[#allocation2 + $0x1a]]  ;;  %s169_s13 = sld [smem:[#allocation2 + $0x1b]] }
  0x1d   :  { %v87_v35 = vstv %s156_s28  ;;  %v95_v36 = vstv %s157_s29  ;;  %v98_v41 = vstv %s224_s30  ;;  %v106_v43 = vstv %s226_s3  ;;  %s170_s14 = sld [smem:[#allocation2 + $0x1c]]  ;;  %s171_s15 = sld [smem:[#allocation2 + $0x1d]] }
  0x1e   :  { %v70_v21 = vadd.f32 %v69_v16, %v67_v15  ;;  %v78_v22 = vadd.f32 %v77_v18, %v75_v17  ;;  %v100_v42 = vstv %s228_s4  ;;  %v108_v44 = vstv %s230_s5  ;;  %s172_s16 = sld [smem:[#allocation2 + $0x1e]] }
  0x1f   :  { %v103_v51 = vstv %s162_s6  ;;  %v111_v52 = vstv %s163_s7 }
  0x20   :  { %v72_v23 = vadd.f32 %v71_v19, %v70_v21  ;;  %v80_v24 = vadd.f32 %v79_v20, %v78_v22  ;;  %v114_v57 = vstv %s236_s8  ;;  %v122_v59 = vstv %s238_s9 }
  0x21   :  { %v116_v58 = vstv %s166_s10  ;;  %v124_v60 = vstv %s167_s11 }
  0x22   :  { %v73_v29 = vmax.f32 %v72_v23, 0.0  ;;  %v81_v30 = vmax.f32 %v80_v24, 0.0  ;;  %v119_v3 = vstv %s168_s12  ;;  %v127_v4 = vstv %s169_s13 }
  0x23   :  { %v130_v9 = vstv %s170_s14  ;;  %v132_v10 = vstv %s171_s15 }
  0x24   :  { %v83_v31 = vmul.f32 %v82_v25, %v73_v29  ;;  %v85_v32 = vmul.f32 %v84_v26, %v81_v30  ;;  %v91_v33 = vmul.f32 %v90_v27, %v73_v29  ;;  %v93_v34 = vmul.f32 %v92_v28, %v81_v30 }
  0x25   :  { %v135_v15 = vstv %s172_s16 }
  0x26   :  { %v86_v37 = vadd.f32 %v85_v32, %v83_v31  ;;  %v94_v38 = vadd.f32 %v93_v34, %v91_v33 }
  0x28   :  { %v88_v39 = vadd.f32 %v87_v35, %v86_v37  ;;  %v96_v40 = vadd.f32 %v95_v36, %v94_v38 }
  0x2a   :  { %v89_v45 = vmax.f32 %v88_v39, 0.0  ;;  %v97_v46 = vmax.f32 %v96_v40, 0.0 }
  0x2c   :  { %v99_v47 = vmul.f32 %v98_v41, %v89_v45  ;;  %v101_v48 = vmul.f32 %v100_v42, %v97_v46  ;;  %v107_v49 = vmul.f32 %v106_v43, %v89_v45  ;;  %v109_v50 = vmul.f32 %v108_v44, %v97_v46 }
  0x2e   :  { %v102_v53 = vadd.f32 %v101_v48, %v99_v47  ;;  %v110_v54 = vadd.f32 %v109_v50, %v107_v49 }
  0x30   :  { %v104_v55 = vadd.f32 %v103_v51, %v102_v53  ;;  %v112_v56 = vadd.f32 %v111_v52, %v110_v54 }
  0x32   :  { %v105_v61 = vmax.f32 %v104_v55, 0.0  ;;  %v113_v62 = vmax.f32 %v112_v56, 0.0 }
  0x34   :  { %v115_v63 = vmul.f32 %v114_v57, %v105_v61  ;;  %v117_v0 = vmul.f32 %v116_v58, %v113_v62  ;;  %v123_v1 = vmul.f32 %v122_v59, %v105_v61  ;;  %v125_v2 = vmul.f32 %v124_v60, %v113_v62 }
  0x36   :  { %v118_v5 = vadd.f32 %v117_v0, %v115_v63  ;;  %v126_v6 = vadd.f32 %v125_v2, %v123_v1 }
  0x38   :  { %v120_v7 = vadd.f32 %v119_v3, %v118_v5  ;;  %v128_v8 = vadd.f32 %v127_v4, %v126_v6 }
  0x3a   :  { %v121_v11 = vmax.f32 %v120_v7, 0.0  ;;  %v129_v12 = vmax.f32 %v128_v8, 0.0 }
  0x3c   :  { %v131_v13 = vmul.f32 %v130_v9, %v121_v11  ;;  %v133_v14 = vmul.f32 %v132_v10, %v129_v12 }
  0x3e   :  { %v134_v16 = vadd.f32 %v133_v14, %v131_v13 }
  0x40   :  { %v136_v17 = vadd.f32 %v135_v15, %v134_v16 }
  0x42   :  { %137 = vst [vmem:[%s251_s2] sm:$0xff] %v136_v17 }
  0x43   :  { %142 = vsyncpa [#allocation3], 1 }

</bundles_post_ra>
